<compile_context>
chip_gen: v7x
topology: tpu7x:2x2x1
jax: 0.10.0
libtpu: 0.0.40
codegen_flags: <defaults>
</compile_context>

<pallas_src>
import math

import jax
import jax.numpy as jnp
from jax.experimental import pallas as pl
from jax.experimental.pallas import tpu as pltpu

_EPS = 1e-07
_PI = float(math.pi)
_LANE = 128
_MAX_BLOCK_ROWS = 1024  # 1024x128 f32 = 512 KiB per stream per buffer


def _cdiv(a, b):
    return -(-a // b)


def _arctan(x):
    """Elementwise arctan from Mosaic-supported ops (cephes atanf, ~1e-7 err).

    Uses a single reciprocal for both range-reduction branches:
      (ax-1)/(ax+1) = 1 - 2/(ax+1)      and      -1/ax.
    """
    sign = jnp.where(x < 0.0, -1.0, 1.0)
    ax = jnp.abs(x)
    tan_3pi_8 = 2.414213562373095    # tan(3*pi/8)
    tan_pi_8 = 0.4142135623730950    # tan(pi/8)
    big = ax > tan_3pi_8
    mid = ax > tan_pi_8
    y0 = jnp.where(big, 0.5 * _PI, jnp.where(mid, 0.25 * _PI, 0.0))
    denom = jnp.where(big, ax + 1e-30, ax + 1.0)
    r = 1.0 / denom
    xr = jnp.where(big, -r, jnp.where(mid, 1.0 - 2.0 * r, ax))
    z = xr * xr
    poly = ((((8.05374449538e-2 * z - 1.38776856032e-1) * z
              + 1.99777106478e-1) * z - 3.33329491539e-1) * z * xr) + xr
    return sign * (y0 + poly)


def _make_loss_sums_kernel(block_rows, num_steps, n_valid, need_mask,
                           compute_bce):
    """Trace-time specialized reduction kernel.

    Accumulates row-wise (lane-dense) partial sums into a resident
    (num_sums, 128) f32 output block:
       row 0: sum(act * y), row 1: sum(act), row 2: sum(y), [row 3: sum(BCE)].
    """

    def kernel(x_ref, y_ref, out_ref):
        s = pl.program_id(1)

        @pl.when(s == 0)
        def _init():
            out_ref[...] = jnp.zeros_like(out_ref)

        x = x_ref[...].astype(jnp.float32)
        y = y_ref[...].astype(jnp.float32)

        # arctan activation: eps + (1 - 2*eps) * (0.5 + arctan(x)/pi)
        act = _EPS + (1.0 - 2.0 * _EPS) * (0.5 + _arctan(x) * (1.0 / _PI))

        if need_mask:
            # Only built when the padded/partial tail exists.  jnp.where (not
            # multiply) so unspecified OOB data (possibly NaN/Inf) is discarded.
            p = pl.program_id(0)
            blk = p * num_steps + s
            row0 = blk * block_rows
            row_ids = jax.lax.broadcasted_iota(
                jnp.int32, (block_rows, _LANE), 0) + row0
            col_ids = jax.lax.broadcasted_iota(
                jnp.int32, (block_rows, _LANE), 1)
            valid = (row_ids * _LANE + col_ids) < n_valid
            xa = jnp.where(valid, act, 0.0)
            ym = jnp.where(valid, y, 0.0)
        else:
            valid = None
            xa = act
            ym = y

        parts = [
            jnp.sum(xa * ym, axis=0, keepdims=True),
            jnp.sum(xa, axis=0, keepdims=True),
            jnp.sum(ym, axis=0, keepdims=True),
        ]
        if compute_bce:
            # act is strictly inside (eps, 1-eps) so both logs are finite.
            bce = -(y * jnp.log(act) + (1.0 - y) * jnp.log(1.0 - act))
            if need_mask:
                bce = jnp.where(valid, bce, 0.0)
            parts.append(jnp.sum(bce, axis=0, keepdims=True))

        out_ref[...] += jnp.concatenate(parts, axis=0)

    return kernel


def _reduction_sums(x_flat, y_flat, compute_bce):
    """Returns (sum(act*y), sum(act), sum(y), sum(BCE) or None, n)."""
    n = x_flat.shape[0]
    rows = _cdiv(n, _LANE)

    # Reshape flat -> (rows, 128).  Only pad the (rare) sub-128 lane tail; the
    # full pad-to-tile copies of the old version are gone.
    lane_pad = rows * _LANE - n
    if lane_pad:
        x_flat = jnp.pad(x_flat, (0, lane_pad))
        y_flat = jnp.pad(y_flat, (0, lane_pad))
    x2 = x_flat.reshape(rows, _LANE)
    y2 = y_flat.reshape(rows, _LANE)

    if rows <= _MAX_BLOCK_ROWS:
        block_rows = rows          # single full block
        rb = 1
    else:
        block_rows = _MAX_BLOCK_ROWS
        rb = _cdiv(rows, block_rows)

    # Leading "parallel" axis: lets v7x split the row range over both TCs;
    # on single-TC chips it just runs serially.
    p_split = 2 if rb >= 2 else 1
    num_steps = _cdiv(rb, p_split)
    covered = p_split * num_steps * block_rows * _LANE
    need_mask = covered != n

    num_sums = 4 if compute_bce else 3
    out_shape = jax.ShapeDtypeStruct((p_split, num_sums, _LANE), jnp.float32)

    def in_index(p, s):
        blk = p * num_steps + s
        # Clamp so an overhang step never requests a fully out-of-range block;
        # its contribution is zeroed by the in-kernel mask anyway.
        return (jnp.minimum(blk, rb - 1), 0)

    in_spec = pl.BlockSpec((block_rows, _LANE), in_index)
    out_spec = pl.BlockSpec((None, num_sums, _LANE), lambda p, s: (p, 0, 0))

    kernel = _make_loss_sums_kernel(block_rows, num_steps, n, need_mask,
                                    compute_bce)

    out = pl.pallas_call(
        kernel,
        grid=(p_split, num_steps),
        in_specs=[in_spec, in_spec],
        out_specs=out_spec,
        out_shape=out_shape,
        compiler_params=pltpu.CompilerParams(
            dimension_semantics=("parallel", "arbitrary")),
    )(x2, y2)

    sums = jnp.sum(out, axis=(0, 2))  # tiny O(1) epilogue reduce
    inter, sx, sy = sums[0], sums[1], sums[2]
    sbce = sums[3] if compute_bce else None
    return inter, sx, sy, sbce, n


def loss_forward(inputs, targets, name="IoULoss",
                 smooth=1.0, alpha_tv=0.5, beta_tv=0.5, gamma_ft=1.0,
                 alpha_focal=0.8, gamma_focal=2.0):
    """Equivalent of Loss(name).forward(inputs, targets). Returns a f32 scalar."""
    x = inputs.reshape(-1)     # stream native dtype; kernel casts to f32
    y = targets.reshape(-1)
    compute_bce = (name == "FocalLoss")
    inter, sx, sy, sbce, n = _reduction_sums(x, y, compute_bce)

    if name == "IoULoss":
        union = sx + sy - inter
        iou = (inter + smooth) / (union + smooth)
        return 1.0 - iou
    elif name == "DiceLoss":
        dice = (2.0 * inter + smooth) / (sx + sy + smooth)
        return 1.0 - dice
    elif name == "FocalLoss":
        bce = sbce / n
        bce_exp = jnp.exp(-bce)
        return alpha_focal * (1.0 - bce_exp) ** gamma_focal * bce
    elif name == "FTLoss":
        tp, fp, fn = inter, sx - inter, sy - inter
        tversky = (tp + smooth) / (tp + alpha_tv * fp + beta_tv * fn + smooth)
        return (1.0 - tversky) ** gamma_ft
    else:  # TverskyLoss
        tp, fp, fn = inter, sx - inter, sy - inter
        tversky = (tp + smooth) / (tp + alpha_tv * fp + beta_tv * fn + smooth)
        return 1.0 - tversky


def _reference_loss(inputs, targets, name, smooth=1.0, alpha_tv=0.5,
                    beta_tv=0.5, gamma_ft=1.0, alpha_focal=0.8,
                    gamma_focal=2.0):
    """Pure-JAX reference (uses jnp.arctan) for correctness checking."""
    x = (_EPS + (1.0 - 2.0 * _EPS)
         * (0.5 + jnp.arctan(inputs.astype(jnp.float32)) / _PI)).reshape(-1)
    y = targets.reshape(-1).astype(jnp.float32)
    inter = jnp.sum(x * y)
    sx = jnp.sum(x)
    sy = jnp.sum(y)
    if name == "IoULoss":
        return 1.0 - (inter + smooth) / (sx + sy - inter + smooth)
    elif name == "DiceLoss":
        return 1.0 - (2.0 * inter + smooth) / (sx + sy + smooth)
    elif name == "FocalLoss":
        bce = jnp.mean(-(y * jnp.log(x) + (1.0 - y) * jnp.log(1.0 - x)))
        return alpha_focal * (1.0 - jnp.exp(-bce)) ** gamma_focal * bce
    elif name == "FTLoss":
        tp, fp, fn = inter, sx - inter, sy - inter
        tv = (tp + smooth) / (tp + alpha_tv * fp + beta_tv * fn + smooth)
        return (1.0 - tv) ** gamma_ft
    else:
        tp, fp, fn = inter, sx - inter, sy - inter
        tv = (tp + smooth) / (tp + alpha_tv * fp + beta_tv * fn + smooth)
        return 1.0 - tv


if __name__ == "__main__":
    key = jax.random.PRNGKey(0)
    k1, k2, k3, k4, k5, k6 = jax.random.split(key, 6)

    # NCHW-shaped logits and binary ground-truth mask (module default config)
    inputs = jax.random.normal(k1, (2, 4, 16, 16), dtype=jnp.float32)
    targets = jax.random.bernoulli(k2, 0.5, (2, 4, 16, 16)).astype(jnp.float32)

    loss = loss_forward(inputs, targets, name="IoULoss")
    jax.block_until_ready(loss)

    # Sanity: every loss head against the pure-JAX reference.
    for nm in ("IoULoss", "DiceLoss", "FocalLoss", "FTLoss", "TverskyLoss"):
        got = loss_forward(inputs, targets, name=nm)
        ref = _reference_loss(inputs, targets, nm)
        assert jnp.allclose(got, ref, rtol=2e-3, atol=2e-4), (nm, got, ref)

    # Ragged size: exercises the in-kernel tail mask (n not a multiple of 128).
    xi = jax.random.normal(k3, (2, 3, 37, 53), dtype=jnp.float32)
    yi = jax.random.bernoulli(k4, 0.5, (2, 3, 37, 53)).astype(jnp.float32)
    got = loss_forward(xi, yi, name="IoULoss")
    ref = _reference_loss(xi, yi, "IoULoss")
    assert jnp.allclose(got, ref, rtol=2e-3, atol=2e-4), (got, ref)

    # Multi-block size: exercises the 2-way parallel split + partial last block.
    xb = jax.random.normal(k5, (2, 4, 130, 130), dtype=jnp.float32)
    yb = jax.random.bernoulli(k6, 0.5, (2, 4, 130, 130)).astype(jnp.float32)
    got = loss_forward(xb, yb, name="FocalLoss")
    ref = _reference_loss(xb, yb, "FocalLoss")
    assert jnp.allclose(got, ref, rtol=2e-3, atol=2e-4), (got, ref)

    print("KERNEL_OK")
</pallas_src>

<mosaic_0001>
module attributes {stable_mosaic.version = 11 : i64} {
  func.func @kernel(%arg0: i32, %arg1: i32, %arg2: memref<16x128xf32, #tpu.memory_space<vmem>>, %arg3: memref<16x128xf32, #tpu.memory_space<vmem>>, %arg4: memref<1x3x128xf32, #tpu.memory_space<vmem>>) attributes {dimension_semantics = [#tpu.dimension_semantics<parallel>, #tpu.dimension_semantics<arbitrary>], iteration_bounds = array<i64: 1, 1>, scalar_prefetch = 0 : i64, scratch_operands = 0 : i64, tpu.core_type = #tpu.core_type<tc>, window_params = [{transform_indices = @transform_0, window_bounds = array<i64: 16, 128>}, {transform_indices = @transform_1, window_bounds = array<i64: 16, 128>}, {transform_indices = @transform_2, window_bounds = array<i64: 1, 3, 128>}]} {
    %c0_i32 = arith.constant 0 : i32
    %0 = arith.cmpi eq, %arg1, %c0_i32 : i32
    %1 = arith.extui %0 : i1 to i32
    %c0_i32_0 = arith.constant 0 : i32
    %2 = arith.cmpi ne, %1, %c0_i32_0 : i32
    scf.if %2 {
      %cst_34 = arith.constant 0.000000e+00 : f32
      %73 = vector.broadcast %cst_34 : f32 to vector<3x128xf32>
      %c0_35 = arith.constant 0 : index
      %c0_36 = arith.constant 0 : index
      %c0_37 = arith.constant 0 : index
      %74 = vector.load %arg4[%c0_35, %c0_36, %c0_37] : memref<1x3x128xf32, #tpu.memory_space<vmem>>, vector<1x3x128xf32>
      %75 = vector.shape_cast %74 : vector<1x3x128xf32> to vector<3x128xf32>
      %76 = vector.shape_cast %73 : vector<3x128xf32> to vector<1x3x128xf32>
      tpu.vector_store %arg4[%c0_35, %c0_36, %c0_37], %76 {strides = array<i32>} : memref<1x3x128xf32, #tpu.memory_space<vmem>>, vector<1x3x128xf32>,
    } else {
    }
    %c0 = arith.constant 0 : index
    %c0_1 = arith.constant 0 : index
    %3 = vector.load %arg2[%c0, %c0_1] : memref<16x128xf32, #tpu.memory_space<vmem>>, vector<16x128xf32>
    %c0_2 = arith.constant 0 : index
    %c0_3 = arith.constant 0 : index
    %4 = vector.load %arg3[%c0_2, %c0_3] : memref<16x128xf32, #tpu.memory_space<vmem>>, vector<16x128xf32>
    %cst = arith.constant 0.000000e+00 : f32
    %5 = vector.broadcast %cst : f32 to vector<16x128xf32>
    %6 = arith.cmpf olt, %3, %5 : vector<16x128xf32>
    %cst_4 = arith.constant -1.000000e+00 : f32
    %cst_5 = arith.constant 1.000000e+00 : f32
    %7 = vector.broadcast %cst_4 : f32 to vector<16x128xf32>
    %8 = vector.broadcast %cst_5 : f32 to vector<16x128xf32>
    %9 = arith.select %6, %7, %8 : vector<16x128xi1>, vector<16x128xf32>
    %10 = math.absf %3 : vector<16x128xf32>
    %cst_6 = arith.constant 2.41421366 : f32
    %11 = vector.broadcast %cst_6 : f32 to vector<16x128xf32>
    %12 = arith.cmpf ogt, %10, %11 : vector<16x128xf32>
    %cst_7 = arith.constant 0.414213568 : f32
    %13 = vector.broadcast %cst_7 : f32 to vector<16x128xf32>
    %14 = arith.cmpf ogt, %10, %13 : vector<16x128xf32>
    %cst_8 = arith.constant 0.785398185 : f32
    %cst_9 = arith.constant 0.000000e+00 : f32
    %15 = vector.broadcast %cst_8 : f32 to vector<16x128xf32>
    %16 = vector.broadcast %cst_9 : f32 to vector<16x128xf32>
    %17 = arith.select %14, %15, %16 : vector<16x128xi1>, vector<16x128xf32>
    %cst_10 = arith.constant 1.57079637 : f32
    %18 = vector.broadcast %cst_10 : f32 to vector<16x128xf32>
    %19 = arith.select %12, %18, %17 : vector<16x128xi1>, vector<16x128xf32>
    %cst_11 = arith.constant 1.000000e-30 : f32
    %20 = vector.broadcast %cst_11 : f32 to vector<16x128xf32>
    %21 = arith.addf %10, %20 : vector<16x128xf32>
    %cst_12 = arith.constant 1.000000e+00 : f32
    %22 = vector.broadcast %cst_12 : f32 to vector<16x128xf32>
    %23 = arith.addf %10, %22 : vector<16x128xf32>
    %24 = arith.select %12, %21, %23 : vector<16x128xi1>, vector<16x128xf32>
    %cst_13 = arith.constant 1.000000e+00 : f32
    %25 = vector.broadcast %cst_13 : f32 to vector<16x128xf32>
    %26 = arith.divf %25, %24 : vector<16x128xf32>
    %cst_14 = arith.constant 0.000000e+00 : f32
    %27 = vector.broadcast %cst_14 : f32 to vector<16x128xf32>
    %28 = arith.subf %27, %26 : vector<16x128xf32>
    %cst_15 = arith.constant 2.000000e+00 : f32
    %29 = vector.broadcast %cst_15 : f32 to vector<16x128xf32>
    %30 = arith.mulf %29, %26 : vector<16x128xf32>
    %cst_16 = arith.constant 1.000000e+00 : f32
    %31 = vector.broadcast %cst_16 : f32 to vector<16x128xf32>
    %32 = arith.subf %31, %30 : vector<16x128xf32>
    %33 = arith.select %14, %32, %10 : vector<16x128xi1>, vector<16x128xf32>
    %34 = arith.select %12, %28, %33 : vector<16x128xi1>, vector<16x128xf32>
    %35 = arith.mulf %34, %34 : vector<16x128xf32>
    %cst_17 = arith.constant 0.0805374458 : f32
    %36 = vector.broadcast %cst_17 : f32 to vector<16x128xf32>
    %37 = arith.mulf %36, %35 : vector<16x128xf32>
    %cst_18 = arith.constant 0.138776854 : f32
    %38 = vector.broadcast %cst_18 : f32 to vector<16x128xf32>
    %39 = arith.subf %37, %38 : vector<16x128xf32>
    %40 = arith.mulf %39, %35 : vector<16x128xf32>
    %cst_19 = arith.constant 0.199777111 : f32
    %41 = vector.broadcast %cst_19 : f32 to vector<16x128xf32>
    %42 = arith.addf %40, %41 : vector<16x128xf32>
    %43 = arith.mulf %42, %35 : vector<16x128xf32>
    %cst_20 = arith.constant 0.333329499 : f32
    %44 = vector.broadcast %cst_20 : f32 to vector<16x128xf32>
    %45 = arith.subf %43, %44 : vector<16x128xf32>
    %46 = arith.mulf %45, %35 : vector<16x128xf32>
    %47 = arith.mulf %46, %34 : vector<16x128xf32>
    %48 = arith.addf %47, %34 : vector<16x128xf32>
    %49 = arith.addf %19, %48 : vector<16x128xf32>
    %50 = arith.mulf %9, %49 : vector<16x128xf32>
    %cst_21 = arith.constant 0.318309873 : f32
    %51 = vector.broadcast %cst_21 : f32 to vector<16x128xf32>
    %52 = arith.mulf %50, %51 : vector<16x128xf32>
    %cst_22 = arith.constant 5.000000e-01 : f32
    %53 = vector.broadcast %cst_22 : f32 to vector<16x128xf32>
    %54 = arith.addf %53, %52 : vector<16x128xf32>
    %cst_23 = arith.constant 0.999999821 : f32
    %55 = vector.broadcast %cst_23 : f32 to vector<16x128xf32>
    %56 = arith.mulf %55, %54 : vector<16x128xf32>
    %cst_24 = arith.constant 1.000000e-07 : f32
    %57 = vector.broadcast %cst_24 : f32 to vector<16x128xf32>
    %58 = arith.addf %57, %56 : vector<16x128xf32>
    %59 = arith.mulf %58, %4 : vector<16x128xf32>
    %cst_25 = arith.constant dense<0.000000e+00> : vector<128xf32>
    %60 = vector.multi_reduction <add>, %59, %cst_25 [0] : vector<16x128xf32> to vector<128xf32>
    %61 = vector.shape_cast %60 : vector<128xf32> to vector<1x128xf32>
    %cst_26 = arith.constant dense<0.000000e+00> : vector<128xf32>
    %62 = vector.multi_reduction <add>, %58, %cst_26 [0] : vector<16x128xf32> to vector<128xf32>
    %63 = vector.shape_cast %62 : vector<128xf32> to vector<1x128xf32>
    %cst_27 = arith.constant dense<0.000000e+00> : vector<128xf32>
    %64 = vector.multi_reduction <add>, %4, %cst_27 [0] : vector<16x128xf32> to vector<128xf32>
    %65 = vector.shape_cast %64 : vector<128xf32> to vector<1x128xf32>
    %c0_28 = arith.constant 0 : index
    %c0_29 = arith.constant 0 : index
    %c0_30 = arith.constant 0 : index
    %66 = vector.load %arg4[%c0_28, %c0_29, %c0_30] : memref<1x3x128xf32, #tpu.memory_space<vmem>>, vector<1x3x128xf32>
    %67 = vector.shape_cast %66 : vector<1x3x128xf32> to vector<3x128xf32>
    %68 = tpu.concatenate %61, %63, %65 in 0 : vector<1x128xf32>, vector<1x128xf32>, vector<1x128xf32> -> vector<3x128xf32>
    %69 = arith.addf %67, %68 : vector<3x128xf32>
    %c0_31 = arith.constant 0 : index
    %c0_32 = arith.constant 0 : index
    %c0_33 = arith.constant 0 : index
    %70 = vector.load %arg4[%c0_31, %c0_32, %c0_33] : memref<1x3x128xf32, #tpu.memory_space<vmem>>, vector<1x3x128xf32>
    %71 = vector.shape_cast %70 : vector<1x3x128xf32> to vector<3x128xf32>
    %72 = vector.shape_cast %69 : vector<3x128xf32> to vector<1x3x128xf32>
    tpu.vector_store %arg4[%c0_31, %c0_32, %c0_33], %72 {strides = array<i32>} : memref<1x3x128xf32, #tpu.memory_space<vmem>>, vector<1x3x128xf32>,
    return
  }
  func.func @transform_0(%arg0: i32, %arg1: i32) -> (i32, i32) {
    %c1_i32 = arith.constant 1 : i32
    %0 = arith.muli %arg0, %c1_i32 : i32
    %1 = arith.addi %0, %arg1 : i32
    %c0_i32 = arith.constant 0 : i32
    %2 = arith.minsi %1, %c0_i32 : i32
    %c0_i32_0 = arith.constant 0 : i32
    %c0_i32_1 = arith.constant 0 : i32
    return %2, %c0_i32_0 : i32, i32
  }
  func.func @transform_1(%arg0: i32, %arg1: i32) -> (i32, i32) {
    %c1_i32 = arith.constant 1 : i32
    %0 = arith.muli %arg0, %c1_i32 : i32
    %1 = arith.addi %0, %arg1 : i32
    %c0_i32 = arith.constant 0 : i32
    %2 = arith.minsi %1, %c0_i32 : i32
    %c0_i32_0 = arith.constant 0 : i32
    %c0_i32_1 = arith.constant 0 : i32
    return %2, %c0_i32_0 : i32, i32
  }
  func.func @transform_2(%arg0: i32, %arg1: i32) -> (i32, i32, i32) {
    %c0_i32 = arith.constant 0 : i32
    %c0_i32_0 = arith.constant 0 : i32
    %c0_i32_1 = arith.constant 0 : i32
    return %arg0, %c0_i32, %c0_i32_0 : i32, i32, i32
  }
}

</mosaic_0001>

<bundles_post_ra>
// kernel: tpu_custom_call.1
= control target key start
LH: loop header
LB: loop body
LE: loop exit
PB: predicated region body
PF: predicated region fallthrough
CT: control target
= control target key end

     0   :  { %7 = vsyncpa [#allocation3], 0  ;;  %s300_s0 = inlined_call_operand.hbm [shape: f32[16,128], index: 0, kind: input, shape index: {}]   ;;  %s301_s1 = inlined_call_operand.hbm [shape: f32[16,128], index: 1, kind: input, shape index: {}]   ;;  %s302_s2 = inlined_call_operand.vmem [shape: f32[1,3,128], index: 2, kind: output, shape index: {}]  }
   0x1   :  { %8 = vsyncpa [#allocation5], 0  ;;  %s236_s9 = smov [#allocation2]   ;;  %s188_s13 = scalar_lea.hbm %s300_s0, 256 }
   0x2   :  { %s20_s10 = sshll.u32 %s236_s9, 4  ;;  %p189_p0 = scmp.ne.s32.totalorder %s300_s0, %s188_s13  ;;  %s21_s10 = int_to_ptr.vmem [resolvable:$true] %s20_s10 }
   0x3   :  { %p192_p1 = scmp.lt.u32.totalorder %s188_s13, %s300_s0 }
   0x5   :  { %p194_p2 = pnand %p192_p1, %p189_p0 }
   0x7   :  { %197 = shalt.err (!%p194_p2)
}
   0x8   :  { %s198_s18 = scalar_lea.vmem %s21_s10, 256  ;;  %p203_p4 = scmp.lt.s32.totalorder %s21_s10, %s21_s10 }
   0x9   :  { %p199_p3 = scmp.ne.s32.totalorder %s21_s10, %s198_s18  ;;  %p204_p5 = scmp.lt.s32.totalorder %s198_s18, %s198_s18 }
   0xb   :  { %p205_p6 = por %p204_p5, %p203_p4 }
   0xd   :  { %p206_p7 = pnand %p205_p6, %p199_p3 }
   0xf   :  { %209 = shalt.err (!%p206_p7)
}
  0x10   :  { %s237_s19 = smov 128   ;;  %s238_s20 = smov 8  }
  0x11   :  { %26 = dma.hbm_to_vmem [thread:$0]  %s300_s0, 256, %s21_s10, [#allocation3], %s237_s19, %s237_s19, %s238_s20  }
  0x12   :  { %s239_s23 = smov [#allocation4]   ;;  %s210_s27 = scalar_lea.hbm %s301_s1, 256 }
  0x13   :  { %s38_s24 = sshll.u32 %s239_s23, 4  ;;  %p211_p8 = scmp.ne.s32.totalorder %s301_s1, %s210_s27  ;;  %s39_s24 = int_to_ptr.vmem [resolvable:$true] %s38_s24 }
  0x14   :  { %p214_p9 = scmp.lt.u32.totalorder %s210_s27, %s301_s1 }
  0x16   :  { %p216_p10 = pnand %p214_p9, %p211_p8 }
  0x18   :  { %219 = shalt.err (!%p216_p10)
}
  0x19   :  { %s220_s4 = scalar_lea.vmem %s39_s24, 256  ;;  %p225_p12 = scmp.lt.s32.totalorder %s39_s24, %s39_s24 }
  0x1a   :  { %p221_p11 = scmp.ne.s32.totalorder %s39_s24, %s220_s4  ;;  %p226_p13 = scmp.lt.s32.totalorder %s220_s4, %s220_s4 }
  0x1c   :  { %p227_p0 = por %p226_p13, %p225_p12 }
  0x1e   :  { %p228_p1 = pnand %p227_p0, %p221_p11 }
  0x20   :  { %231 = shalt.err (!%p228_p1)
}
  0x21   :  { %44 = dma.hbm_to_vmem [thread:$0]  %s301_s1, 256, %s39_s24, [#allocation5], %s237_s19, %s237_s19, %s238_s20  }
  0x22   :  { %232 = dma.done.wait [#allocation3], 256  }
  0x23   :  { %233 = vsyncadd [#allocation3], 4294967040 }
  0x24   :  { %234 = dma.done.wait [#allocation5], 256  }
  0x25   :  { %235 = vsyncadd [#allocation5], 4294967040  ;;  %v240_v0 = vmov 0.0   ;;  %v64_v1 = vld [vmem:[#allocation2] sm:$0xff]  ;;  %v65_v2 = vld [vmem:[#allocation2 + $0x8] sm:$0xff]  ;;  %v241_v46 = vmov 1.0  }
  0x26   :  { %63 = vst [vmem:[%s302_s2] sm:$0x7] %v240_v0  ;;  %v72_v3 = vand.u32 2147483647, %v64_v1  ;;  %v73_v4 = vand.u32 2147483647, %v65_v2  ;;  %vm68_vm4 = vcmp.lt.f32.partialorder %v64_v1, 0.0 }
  0x27   :  { %vm69_vm5 = vcmp.lt.f32.partialorder %v65_v2, 0.0  ;;  %v70_v47 = vsel %vm68_vm4, -1.0, %v241_v46  ;;  %v66_v51 = vld [vmem:[#allocation4] sm:$0xff]  ;;  %v67_v52 = vld [vmem:[#allocation4 + $0x8] sm:$0xff]  ;;  %vm158_vm6 = vcmask 1040384   ;;  %vm160_vm7 = vcmask 1041408  }
  0x28   :  { %v82_v5 = vadd.f32 1e-30, %v72_v3  ;;  %vm74_vm0 = vcmp.gt.f32.partialorder %v72_v3, 2.4142137  ;;  %vm75_vm1 = vcmp.gt.f32.partialorder %v73_v4, 2.4142137  ;;  %v150_v55 = vadd.f32 %v67_v52, %v66_v51 }
  0x29   :  { %v83_v6 = vadd.f32 1e-30, %v73_v4  ;;  %v84_v7 = vadd.f32 1.0, %v72_v3  ;;  %v85_v8 = vadd.f32 1.0, %v73_v4  ;;  %vm76_vm2 = vcmp.gt.f32.partialorder %v72_v3, 0.41421357 }
  0x2a   :  { %vm77_vm3 = vcmp.gt.f32.partialorder %v73_v4, 0.41421357  ;;  %v78_v37 = vsel %vm76_vm2, 0.7853982, %v240_v0  ;;  %v71_v49 = vsel %vm69_vm5, -1.0, %v241_v46  ;;  %v151_v60 = vrot.slane %v150_v55, 4 }
  0x2b   :  { %v86_v9 = vsel %vm74_vm0, %v82_v5, %v84_v7  ;;  %v87_v10 = vsel %vm75_vm1, %v83_v6, %v85_v8  ;;  %v79_v39 = vsel %vm77_vm3, 0.7853982, %v240_v0  ;;  %v80_v42 = vsel %vm74_vm0, 1.5707964, %v78_v37 }
  0x2c   :  { %184 = vrcp.f32 %v86_v9  ;;  %v81_v44 = vsel %vm75_vm1, 1.5707964, %v79_v39  ;;  %v152_v1 = vadd.f32 %v151_v60, %v150_v55 }
  0x2d   :  { %186 = vrcp.f32 %v87_v10 }
  0x2e   :  { %v153_v6 = vrot.slane %v152_v1, 2 }
  0x36   :  { %v185_v11 = vpop.eup %184 }
  0x37   :  { %v187_v12 = vpop.eup %186  ;;  %v94_v13 = vmul.f32 2.0, %v185_v11  ;;  %v92_v14 = vsub.f32 0.0, %v185_v11  ;;  %v154_v11 = vadd.f32 %v153_v6, %v152_v1 }
  0x38   :  { %v95_v15 = vmul.f32 2.0, %v187_v12  ;;  %v93_v16 = vsub.f32 0.0, %v187_v12 }
  0x39   :  { %v96_v17 = vsub.f32 1.0, %v94_v13 }
  0x3a   :  { %v97_v18 = vsub.f32 1.0, %v95_v15 }
  0x3b   :  { %v98_v19 = vsel %vm76_vm2, %v96_v17, %v72_v3 }
  0x3c   :  { %v99_v20 = vsel %vm77_vm3, %v97_v18, %v73_v4  ;;  %v100_v21 = vsel %vm74_vm0, %v92_v14, %v98_v19 }
  0x3d   :  { %v101_v22 = vsel %vm75_vm1, %v93_v16, %v99_v20  ;;  %v102_v23 = vmul.f32 %v100_v21, %v100_v21  ;;  %v155_v16 = vrot.slane %v154_v11, 1 }
  0x3e   :  { %v103_v24 = vmul.f32 %v101_v22, %v101_v22 }
  0x3f   :  { %v104_v25 = vmul.f32 0.080537446, %v102_v23 }
  0x40   :  { %v105_v26 = vmul.f32 0.080537446, %v103_v24 }
  0x41   :  { %v174_v27 = vadd.f32 -0.13877685, %v104_v25 }
  0x42   :  { %v175_v28 = vadd.f32 -0.13877685, %v105_v26 }
  0x43   :  { %v108_v29 = vmul.f32 %v174_v27, %v102_v23 }
  0x44   :  { %v109_v30 = vmul.f32 %v175_v28, %v103_v24 }
  0x45   :  { %v110_v31 = vadd.f32 0.19977711, %v108_v29 }
  0x46   :  { %v111_v32 = vadd.f32 0.19977711, %v109_v30 }
  0x47   :  { %v112_v33 = vmul.f32 %v110_v31, %v102_v23 }
  0x48   :  { %v113_v34 = vmul.f32 %v111_v32, %v103_v24 }
  0x49   :  { %v176_v35 = vadd.f32 -0.3333295, %v112_v33 }
  0x4a   :  { %v177_v36 = vadd.f32 -0.3333295, %v113_v34 }
  0x4b   :  { %v116_v38 = vmul.f32 %v176_v35, %v102_v23  ;;  %v157_v23 = vld [vmem:[%s302_s2] sm:$0x7] }
  0x4c   :  { %v117_v40 = vmul.f32 %v177_v36, %v103_v24 }
  0x4d   :  { %v118_v41 = vmul.f32 %v116_v38, %v100_v21 }
  0x4e   :  { %v119_v43 = vmul.f32 %v117_v40, %v101_v22 }
  0x4f   :  { %v120_v45 = vadd.f32 %v118_v41, %v100_v21  ;;  %v156_v21 = vadd.f32 %v155_v16, %v154_v11 }
  0x50   :  { %v121_v48 = vadd.f32 %v119_v43, %v101_v22 }
  0x51   :  { %v122_v50 = vadd.f32 %v120_v45, %v80_v42 }
  0x52   :  { %v123_v53 = vadd.f32 %v121_v48, %v81_v44 }
  0x53   :  { %v124_v54 = vmul.f32 %v122_v50, %v70_v47 }
  0x54   :  { %v125_v56 = vmul.f32 %v123_v53, %v71_v49 }
  0x55   :  { %v126_v57 = vmul.f32 0.31830987, %v124_v54 }
  0x56   :  { %v127_v58 = vmul.f32 0.31830987, %v125_v56 }
  0x57   :  { %v128_v59 = vadd.f32 0.5, %v126_v57 }
  0x58   :  { %v129_v61 = vadd.f32 0.5, %v127_v58 }
  0x59   :  { %v130_v62 = vmul.f32 0.9999998, %v128_v59 }
  0x5a   :  { %v131_v63 = vmul.f32 0.9999998, %v129_v61 }
  0x5b   :  { %v132_v0 = vadd.f32 1e-07, %v130_v62 }
  0x5c   :  { %v133_v2 = vadd.f32 1e-07, %v131_v63 }
  0x5d   :  { %v134_v3 = vmul.f32 %v132_v0, %v66_v51 }
  0x5e   :  { %v135_v4 = vmul.f32 %v133_v2, %v67_v52  ;;  %v143_v5 = vadd.f32 %v133_v2, %v132_v0 }
  0x60   :  { %v136_v7 = vadd.f32 %v135_v4, %v134_v3  ;;  %v144_v8 = vrot.slane %v143_v5, 4 }
  0x62   :  { %v137_v9 = vrot.slane %v136_v7, 4  ;;  %v145_v10 = vadd.f32 %v144_v8, %v143_v5 }
  0x64   :  { %v138_v12 = vadd.f32 %v137_v9, %v136_v7  ;;  %v146_v13 = vrot.slane %v145_v10, 2 }
  0x66   :  { %v139_v14 = vrot.slane %v138_v12, 2  ;;  %v147_v15 = vadd.f32 %v146_v13, %v145_v10 }
  0x68   :  { %v140_v17 = vadd.f32 %v139_v14, %v138_v12  ;;  %v148_v18 = vrot.slane %v147_v15, 1 }
  0x6a   :  { %v141_v19 = vrot.slane %v140_v17, 1  ;;  %v149_v20 = vadd.f32 %v148_v18, %v147_v15 }
  0x6c   :  { %v142_v22 = vadd.f32 %v141_v19, %v140_v17 }
  0x6e   :  { %v159_v24 = vsel %vm158_vm6, %v142_v22, %v149_v20 }
  0x6f   :  { %v161_v25 = vsel %vm160_vm7, %v159_v24, %v156_v21 }
  0x70   :  { %v162_v26 = vadd.f32 %v161_v25, %v157_v23 }
  0x72   :  { %163 = vst [vmem:[%s302_s2] sm:$0x7] %v162_v26 }
  0x73   :  { %168 = vsyncpa [#allocation3], 1 }
  0x74   :  { %169 = vsyncpa [#allocation5], 1 }

</bundles_post_ra>
